<compile_context>
chip_gen: v5e
topology: v5e:2x2
jax: 0.10.0
libtpu: 0.0.40
codegen_flags: <defaults>
</compile_context>

<pallas_src>
import jax
import jax.numpy as jnp
from jax.experimental import pallas as pl
from jax.experimental.pallas import tpu as pltpu


def _round_up(x, m):
    return ((x + m - 1) // m) * m


def model1h_kernel(x_ref, w1_ref, b1_ref, w2_ref, b2_ref, o_ref):
    # --- Linear 1: [TB, F] @ [F, H] + [1, H]  (bf16 MXU inputs, f32 accum) ---
    h = jnp.dot(x_ref[...].astype(jnp.bfloat16),
                w1_ref[...].astype(jnp.bfloat16),
                preferred_element_type=jnp.float32)
    h = h + b1_ref[...]

    # --- Hardtanh: clamp to [-1, 1] (f32 on the VPU) ---
    h = jnp.clip(h, -1.0, 1.0)

    # --- Linear 2: [TB, H] @ [H, C] + [1, C] ---
    logits = jnp.dot(h.astype(jnp.bfloat16),
                     w2_ref[...].astype(jnp.bfloat16),
                     preferred_element_type=jnp.float32)
    logits = logits + b2_ref[...]

    # --- Numerically stable softmax along the class axis (exact division) ---
    m = jnp.max(logits, axis=-1, keepdims=True)
    e = jnp.exp(logits - m)
    denom = jnp.sum(e, axis=-1, keepdims=True)
    o_ref[...] = (e / denom).astype(o_ref.dtype)


_NO_GRID_BUDGET = 16 << 20   # VMEM budget for the whole-array (no-grid) path
_TILE_DB_BUDGET = 8 << 20    # double-buffered per-tile budget (grid path)
_VMEM_LIMIT = 32 << 20       # explicit scoped-VMEM limit, safe on v5e/v6e/v7x


def model1h_forward(x, w1, b1, w2, b2, *, block_b=None):
    """x: [B, F], w1: [F, H], b1: [1, H] or [H], w2: [H, C], b2: [1, C] or [C].
    Returns softmax probabilities [B, C] in float32."""
    B, F = x.shape
    H = w1.shape[-1]
    C = w2.shape[-1]

    # No standalone cast/pad passes: everything stays f32 (no-ops if already f32).
    xf = x.astype(jnp.float32)
    w1f = w1.astype(jnp.float32)
    w2f = w2.astype(jnp.float32)
    b1f = b1.astype(jnp.float32).reshape(1, H)
    b2f = b2.astype(jnp.float32).reshape(1, C)

    row_bytes = (F + C) * 4                      # one f32 x row + one f32 out row
    weight_bytes = 4 * (F * H + H + H * C + C)
    B8 = _round_up(B, 8)

    if block_b is not None:
        TB = min(_round_up(max(int(block_b), 8), 8), B8)
    elif B8 * row_bytes + weight_bytes <= _NO_GRID_BUDGET:
        TB = B8                                  # whole batch: single tile
    else:
        # Big batch: large tiles (low per-step overhead on single-TC v5e/v6e)
        # with a small even tile count so both v7x TensorCores stay busy.
        max_tb = max(8, (_TILE_DB_BUDGET // (2 * row_bytes)) // 8 * 8)
        num_tiles = max(2, -(-B // max_tb))
        if num_tiles % 2:
            num_tiles += 1
        TB = _round_up(-(-B // num_tiles), 8)

    B_pad = _round_up(B8, TB)
    if B_pad != B:
        xf = jnp.zeros((B_pad, F), jnp.float32).at[:B].set(xf)

    num_tiles = B_pad // TB
    out_shape = jax.ShapeDtypeStruct((B_pad, C), jnp.float32)

    if num_tiles == 1:
        # No grid, no software pipeline: whole arrays VMEM-resident.
        vmem = pl.BlockSpec(memory_space=pltpu.MemorySpace.VMEM)
        out = pl.pallas_call(
            model1h_kernel,
            out_shape=out_shape,
            in_specs=[vmem, vmem, vmem, vmem, vmem],
            out_specs=vmem,
            compiler_params=pltpu.CompilerParams(vmem_limit_bytes=_VMEM_LIMIT),
        )(xf, w1f, b1f, w2f, b2f)
    else:
        # Batch-gridded path: x / out tiled over batch, weights VMEM-resident.
        out = pl.pallas_call(
            model1h_kernel,
            out_shape=out_shape,
            grid=(num_tiles,),
            in_specs=[
                pl.BlockSpec((TB, F), lambda i: (i, 0)),
                pl.BlockSpec((F, H), lambda i: (0, 0)),
                pl.BlockSpec((1, H), lambda i: (0, 0)),
                pl.BlockSpec((H, C), lambda i: (0, 0)),
                pl.BlockSpec((1, C), lambda i: (0, 0)),
            ],
            out_specs=pl.BlockSpec((TB, C), lambda i: (i, 0)),
            compiler_params=pltpu.CompilerParams(
                dimension_semantics=("parallel",),   # shards across v7x's 2 TCs
                vmem_limit_bytes=_VMEM_LIMIT,
            ),
        )(xf, w1f, b1f, w2f, b2f)

    if B_pad != B:
        out = out[:B]
    return out


def _reference(x, w1, b1, w2, b2, *, cast_bf16):
    """Plain-JAX reference; optionally mirrors the kernel's bf16 MXU inputs."""
    b1 = b1.reshape(1, -1)
    b2 = b2.reshape(1, -1)
    if cast_bf16:
        h = jnp.dot(x.astype(jnp.bfloat16), w1.astype(jnp.bfloat16),
                    preferred_element_type=jnp.float32) + b1
        h = jnp.clip(h, -1.0, 1.0)
        logits = jnp.dot(h.astype(jnp.bfloat16), w2.astype(jnp.bfloat16),
                         preferred_element_type=jnp.float32) + b2
    else:
        h = jnp.clip(x @ w1 + b1, -1.0, 1.0)
        logits = h @ w2 + b2
    return jax.nn.softmax(logits, axis=-1)


if __name__ == "__main__":
    # Shapes consistent with the module: input_size (genes) = 32, HID1N = 32,
    # output_size (classes) = 8, batch = 8.
    B, F, H, C = 8, 32, 32, 8

    key = jax.random.PRNGKey(0)
    kx, kw1, kb1, kw2, kb2 = jax.random.split(key, 5)

    x = jax.random.normal(kx, (B, F), dtype=jnp.float32)

    # Deterministic parameter init (uniform, PyTorch-Linear-like scale).
    bound1 = 1.0 / float(jnp.sqrt(F))
    bound2 = 1.0 / float(jnp.sqrt(H))
    w1 = jax.random.uniform(kw1, (F, H), jnp.float32, -bound1, bound1)
    b1 = jax.random.uniform(kb1, (1, H), jnp.float32, -bound1, bound1)
    w2 = jax.random.uniform(kw2, (H, C), jnp.float32, -bound2, bound2)
    b2 = jax.random.uniform(kb2, (1, C), jnp.float32, -bound2, bound2)

    # --- Small batch: exercises the whole-array (no-grid) path ---
    out = jax.block_until_ready(model1h_forward(x, w1, b1, w2, b2))
    ref_bf16 = _reference(x, w1, b1, w2, b2, cast_bf16=True)
    ref_f32 = _reference(x, w1, b1, w2, b2, cast_bf16=False)

    assert out.shape == (B, C)
    assert jnp.allclose(jnp.sum(out, axis=-1), 1.0, atol=1e-4), "rows must sum to 1"
    assert jnp.allclose(out, ref_bf16, atol=5e-3, rtol=5e-3), "mismatch vs bf16 reference"
    assert jnp.allclose(out, ref_f32, atol=5e-2, rtol=5e-2), "mismatch vs f32 reference"

    # --- Larger batch: exercises the batch-gridded path (4 even tiles) ---
    B2 = 256
    x2 = jax.random.normal(jax.random.PRNGKey(1), (B2, F), dtype=jnp.float32)
    out2 = jax.block_until_ready(model1h_forward(x2, w1, b1, w2, b2, block_b=64))
    ref2 = _reference(x2, w1, b1, w2, b2, cast_bf16=True)
    assert out2.shape == (B2, C)
    assert jnp.allclose(jnp.sum(out2, axis=-1), 1.0, atol=1e-4), "rows must sum to 1"
    assert jnp.allclose(out2, ref2, atol=5e-3, rtol=5e-3), "mismatch vs reference (gridded)"

    print("KERNEL_OK")
</pallas_src>

<mosaic_0001>
module attributes {stable_mosaic.version = 11 : i64} {
  func.func @model1h_kernel(%arg0: memref<8x32xf32, #tpu.memory_space<vmem>>, %arg1: memref<32x32xf32, #tpu.memory_space<vmem>>, %arg2: memref<1x32xf32, #tpu.memory_space<vmem>>, %arg3: memref<32x8xf32, #tpu.memory_space<vmem>>, %arg4: memref<1x8xf32, #tpu.memory_space<vmem>>, %arg5: memref<8x8xf32, #tpu.memory_space<vmem>>) attributes {dimension_semantics = [], scalar_prefetch = 0 : i64, scratch_operands = 0 : i64, tpu.core_type = #tpu.core_type<tc>} {
    %c0 = arith.constant 0 : index
    %c0_0 = arith.constant 0 : index
    %0 = vector.load %arg0[%c0, %c0_0] : memref<8x32xf32, #tpu.memory_space<vmem>>, vector<8x32xf32>
    %1 = arith.truncf %0 : vector<8x32xf32> to vector<8x32xbf16>
    %c0_1 = arith.constant 0 : index
    %c0_2 = arith.constant 0 : index
    %2 = vector.load %arg1[%c0_1, %c0_2] : memref<32x32xf32, #tpu.memory_space<vmem>>, vector<32x32xf32>
    %3 = arith.truncf %2 : vector<32x32xf32> to vector<32x32xbf16>
    %cst = arith.constant dense<0.000000e+00> : vector<8x32xf32>
    %4 = tpu.matmul %1, %3, %cst {dimension_numbers = #tpu.dot_dimension_numbers<[1], [0], [0], [1], [0, 0, 1, 1], [], []>} : vector<8x32xbf16>, vector<32x32xbf16>, vector<8x32xf32> -> vector<8x32xf32>
    %c0_3 = arith.constant 0 : index
    %c0_4 = arith.constant 0 : index
    %5 = vector.load %arg2[%c0_3, %c0_4] : memref<1x32xf32, #tpu.memory_space<vmem>>, vector<1x32xf32>
    %6 = vector.broadcast %5 : vector<1x32xf32> to vector<8x32xf32>
    %7 = arith.addf %4, %6 : vector<8x32xf32>
    %cst_5 = arith.constant -1.000000e+00 : f32
    %cst_6 = arith.constant 1.000000e+00 : f32
    %8 = vector.broadcast %cst_5 : f32 to vector<8x32xf32>
    %9 = arith.maximumf %8, %7 : vector<8x32xf32>
    %10 = vector.broadcast %cst_6 : f32 to vector<8x32xf32>
    %11 = arith.minimumf %10, %9 : vector<8x32xf32>
    %12 = arith.truncf %11 : vector<8x32xf32> to vector<8x32xbf16>
    %c0_7 = arith.constant 0 : index
    %c0_8 = arith.constant 0 : index
    %13 = vector.load %arg3[%c0_7, %c0_8] : memref<32x8xf32, #tpu.memory_space<vmem>>, vector<32x8xf32>
    %14 = arith.truncf %13 : vector<32x8xf32> to vector<32x8xbf16>
    %cst_9 = arith.constant dense<0.000000e+00> : vector<8x8xf32>
    %15 = tpu.matmul %12, %14, %cst_9 {dimension_numbers = #tpu.dot_dimension_numbers<[1], [0], [0], [1], [0, 0, 1, 1], [], []>} : vector<8x32xbf16>, vector<32x8xbf16>, vector<8x8xf32> -> vector<8x8xf32>
    %c0_10 = arith.constant 0 : index
    %c0_11 = arith.constant 0 : index
    %16 = vector.load %arg4[%c0_10, %c0_11] : memref<1x8xf32, #tpu.memory_space<vmem>>, vector<1x8xf32>
    %17 = vector.broadcast %16 : vector<1x8xf32> to vector<8x8xf32>
    %18 = arith.addf %15, %17 : vector<8x8xf32>
    %cst_12 = arith.constant dense<0xFF800000> : vector<8xf32>
    %19 = vector.multi_reduction <maximumf>, %18, %cst_12 [1] : vector<8x8xf32> to vector<8xf32>
    %20 = vector.shape_cast %19 : vector<8xf32> to vector<8x1xf32>
    %21 = vector.broadcast %20 : vector<8x1xf32> to vector<8x8xf32>
    %22 = arith.subf %18, %21 : vector<8x8xf32>
    %23 = math.exp %22 : vector<8x8xf32>
    %cst_13 = arith.constant dense<0.000000e+00> : vector<8xf32>
    %24 = vector.multi_reduction <add>, %23, %cst_13 [1] : vector<8x8xf32> to vector<8xf32>
    %25 = vector.shape_cast %24 : vector<8xf32> to vector<8x1xf32>
    %26 = vector.broadcast %25 : vector<8x1xf32> to vector<8x8xf32>
    %27 = arith.divf %23, %26 : vector<8x8xf32>
    %c0_14 = arith.constant 0 : index
    %c0_15 = arith.constant 0 : index
    %28 = vector.load %arg5[%c0_14, %c0_15] : memref<8x8xf32, #tpu.memory_space<vmem>>, vector<8x8xf32>
    tpu.vector_store %arg5[%c0_14, %c0_15], %27 {strides = array<i32>} : memref<8x8xf32, #tpu.memory_space<vmem>>, vector<8x8xf32>,
    return
  }
}

</mosaic_0001>

<bundles_post_ra>
// kernel: tpu_custom_call.1
= control target key start
LH: loop header
LB: loop body
LE: loop exit
PB: predicated region body
PF: predicated region fallthrough
CT: control target
= control target key end

     0   :  { %s228_s0 = inlined_call_operand.vmem [shape: f32[8,32], index: 0, kind: input, shape index: {}]   ;;  %s229_s1 = inlined_call_operand.vmem [shape: f32[32,32], index: 1, kind: input, shape index: {}]   ;;  %s230_s2 = inlined_call_operand.vmem [shape: f32[1,32], index: 2, kind: input, shape index: {}]   ;;  %s231_s3 = inlined_call_operand.vmem [shape: f32[32,8], index: 3, kind: input, shape index: {}]   ;;  %s232_s4 = inlined_call_operand.vmem [shape: f32[1,8], index: 4, kind: input, shape index: {}]   ;;  %s233_s5 = inlined_call_operand.hbm [shape: f32[8,8], index: 5, kind: output, shape index: {}]  }
   0x1   :  { %v26_v0 = vld [vmem:[%s229_s1 + $0x10] sm:$0xff]  ;;  %v27_v1 = vld [vmem:[%s229_s1 + $0x18] sm:$0xff]  ;;  %v24_v2 = vld [vmem:[%s229_s1] sm:$0xff] }
   0x2   :  { %v29_v3 = vpack.c.bf16 %v27_v1, %v26_v0  ;;  %v25_v4 = vld [vmem:[%s229_s1 + $0x8] sm:$0xff] }
   0x3   :  { %10 = vsyncpa [#allocation3], 0  ;;  %v28_v5 = vpack.c.bf16 %v25_v4, %v24_v2  ;;  %v22_v6 = vld [vmem:[%s228_s0] sm:$0xff]  ;;  %vm34_vm0 = vcmask 261120   ;;  %v56_v8 = vld [vmem:[%s231_s3 + $0x10] sm:$0xff]  ;;  %vm80_vm1 = vcmask 64512  }
   0x4   :  { %44 = vmatpush.bf16.msra.mxu0 %v29_v3  ;;  %v23_v7 = vpack.c.bf16 %v22_v6, %v22_v6  ;;  %v57_v9 = vld [vmem:[%s231_s3 + $0x18] sm:$0xff]  ;;  %v54_v11 = vld [vmem:[%s231_s3] sm:$0xff]  ;;  %v55_v12 = vld [vmem:[%s231_s3 + $0x8] sm:$0xff]  ;;  %s113_s14 = sshll.u32 %s233_s5, 4  ;;  %s114_s14 = int_to_ptr.hbm [resolvable:$true] %s113_s14 }
   0x5   :  { %v59_v10 = vpack.c.bf16 %v57_v9, %v56_v8  ;;  %v58_v13 = vpack.c.bf16 %v55_v12, %v54_v11  ;;  %v126_v14 = vld [vmem:[%s230_s2] ss:$0 sm:$0xff]  ;;  %s158_s2 = smov [#allocation2]  }
   0x6   :  { %v127_v20 = vld [vmem:[%s232_s4] ss:$0 sm:$0xff]  ;;  %s111_s3 = sshll.u32 %s158_s2, 4  ;;  %s112_s3 = int_to_ptr.vmem [resolvable:$true] %s111_s3 }
   0x7   :  { %73 = vmatpush.bf16.msra.mxu1 %v59_v10 }
   0x8   :  { %45 = vmatpush.bf16.msra.mxu0 %v28_v5 }
   0xb   :  { %122 = vmatmul.msk.bf16.vlgmr.msra.gmra.mxu0 %vm34_vm0, %v23_v7  ;;  %74 = vmatpush.bf16.msra.mxu1 %v58_v13 }
  0x88   :  { %v47_v15 = vpop.f32.mrf.mxu0 }
  0x89   :  { %v48_v16 = vadd.f32 %v126_v14, %v47_v15 }
  0x8b   :  { %v123_v17 = vclamps-f32 %v48_v16, 1.0 }
  0x8d   :  { %v53_v18 = vpack.c.bf16 %v123_v17, %v123_v17 }
  0x8f   :  { %124 = vmatmul.msk.bf16.vlgmr.msra.gmra.mxu1 %vm34_vm0, %v53_v18 }
  0x90   :  { %v49_v19 = vpop.f32.mrf.mxu0 }
 0x10c   :  { %v76_v21 = vpop.f32.mrf.mxu1 }
 0x10d   :  { %v77_v22 = vadd.f32 %v127_v20, %v76_v21 }
 0x10f   :  { %v81_v23 = vsel %vm80_vm1, %v77_v22, -inf }
 0x110   :  { %82 = vmax.xlane.f32.xlu0 %v81_v23 }
 0x114   :  { %v78_v24 = vpop.f32.mrf.mxu1 }
 0x183   :  { %v83_v25 = vpop.xlane.xlu0 %82 }
 0x184   :  { %v84_v26 = vsub.f32 %v77_v22, %v83_v25 }
 0x186   :  { %v85_v27 = vmul.f32 1.442695, %v84_v26 }
 0x188   :  { %128 = vpow2.f32 %v85_v27 }
 0x18e   :  { %v129_v28 = vpop.eup %128 }
 0x18f   :  { %v87_v29 = vsel %vm80_vm1, %v129_v28, 0.0 }
 0x190   :  { %88 = vadd.xlane.f32.xlu0 %v87_v29 }
 0x203   :  { %v89_v30 = vpop.xlane.xlu0 %88 }
 0x204   :  { %130 = vrcp.f32 %v89_v30  ;;  %v101_v34 = vand.u32 2147483648, %v89_v30  ;;  %v99_v36 = vand.u32 2147483647, %v89_v30  ;;  %vm95_vm3 = vweird.f32 %v89_v30 }
 0x206   :  { %v102_v38 = vor.u32 1.1754944e-38, %v101_v34  ;;  %vm100_vm5 = vcmp.eq.f32.partialorder %v99_v36, 8.507059e+37 }
 0x20a   :  { %v131_v31 = vpop.eup %130 }
 0x20b   :  { %v91_v32 = vmul.f32 %v131_v31, %v89_v30  ;;  %vm96_vm2 = vweird.f32 %v131_v31 }
 0x20c   :  { %vm97_vm4 = vmor %vm95_vm3, %vm96_vm2 }
 0x20d   :  { %v92_v33 = vsub.f32 1.0, %v91_v32 }
 0x20f   :  { %v93_v35 = vmul.f32 %v131_v31, %v92_v33 }
 0x211   :  { %v94_v37 = vadd.f32 %v131_v31, %v93_v35 }
 0x213   :  { %v98_v39 = vsel %vm97_vm4, %v131_v31, %v94_v37 }
 0x214   :  { %v103_v40 = vsel %vm100_vm5, %v102_v38, %v98_v39 }
 0x215   :  { %v104_v41 = vmul.f32 %v129_v28, %v103_v40 }
 0x217   :  { %105 = vst.msk [vmem:[#allocation2] sm:$0xff] %vm80_vm1, %v104_v41 }
 0x218   :  { %116 = dma.vmem_to_hbm [thread:$0]  %s112_s3, 128, %s114_s14, [#allocation3]  }
 0x219   :  { %156 = dma.done.wait [#allocation3], 128  }
 0x21a   :  { %157 = vsyncadd [#allocation3], 4294967168 }
 0x21b   :  { %121 = vsyncpa [#allocation3], 1 }

</bundles_post_ra>
